<compile_context>
chip_gen: v7x
topology: tpu7x:2x2x1
jax: 0.10.0
libtpu: 0.0.40
codegen_flags: <defaults>
</compile_context>

<pallas_src>
import math
import functools

import jax
import jax.numpy as jnp
from jax.experimental import pallas as pl
from jax.experimental.pallas import tpu as pltpu


# --------------------------------------------------------------------------
# Tiled / pipelined GAP kernel: feat[n, c] = mean_hw x[n, c, hw]
# --------------------------------------------------------------------------
def _gap_kernel(x_ref, feat_ref, acc_ref, *, inv_hw, thw):
    t = pl.program_id(1)

    @pl.when(t == 0)
    def _():
        acc_ref[...] = jnp.zeros_like(acc_ref)

    # bf16 stream -> f32 accumulation (valid on v5e: cast right after load).
    xt = x_ref[...].astype(jnp.float32)                 # (TN, C, THW)
    # Lane-wide partial sums: pure VALU adds per tile; the single cross-lane
    # (XLU) reduce happens only once, in the finalize branch below.
    part = xt[:, :, 0:128]
    for i in range(1, thw // 128):
        part = part + xt[:, :, i * 128:(i + 1) * 128]
    acc_ref[...] += part                                 # (TN, C, 128)

    @pl.when(t == pl.num_programs(1) - 1)
    def _():
        feat_ref[...] = jnp.sum(acc_ref[...], axis=-1) * inv_hw


@functools.partial(jax.jit, static_argnames=("hw_true",))
def _gap_features(x3, *, hw_true):
    """x3: (N, C, HW) bf16  ->  feat: (N, C) f32, x read from HBM once."""
    N, C, HW = x3.shape

    # Pad the spatial axis to a lane-aligned multiple of the tile size.
    HWp = ((HW + 127) // 128) * 128
    # Per-buffer x tile = TN*C*THW*2 bytes (bf16), double-buffered by the
    # pipeline.  2048 lanes keeps this far under v5e's 16 MiB scoped-VMEM
    # default and v7x's 64 MiB VMEM for moderate C; shrink for very large C.
    THW = min(HWp, 2048)
    HWp = ((HWp + THW - 1) // THW) * THW
    if HWp != HW:   # zero-padding does not change the sum; divide by true HW.
        x3 = jnp.pad(x3, ((0, 0), (0, 0), (0, HWp - HW)))

    TN = 8 if (N > 8 and N % 8 == 0) else N
    nb, nt = N // TN, HWp // THW

    kernel = functools.partial(_gap_kernel, inv_hw=1.0 / float(hw_true), thw=THW)
    return pl.pallas_call(
        kernel,
        out_shape=jax.ShapeDtypeStruct((N, C), jnp.float32),
        grid=(nb, nt),
        in_specs=[pl.BlockSpec((TN, C, THW), lambda bi, ti: (bi, 0, ti))],
        out_specs=pl.BlockSpec((TN, C), lambda bi, ti: (bi, 0)),
        scratch_shapes=[pltpu.VMEM((TN, C, 128), jnp.float32)],
        compiler_params=pltpu.CompilerParams(
            dimension_semantics=("parallel", "arbitrary")),
    )(x3)


# --------------------------------------------------------------------------
# Fused SAR head kernel: 2x entropy pass + SAM + SGD(momentum), all in VMEM
# --------------------------------------------------------------------------
def _sar_head_kernel(feat_ref, featT_ref, w_ref, b_ref, mw_ref, mb_ref,
                     logits_ref, w_out, b_out, mw_out, mb_out, stats_ref,
                     *, K, Kp, margin, rho, lr, momentum):
    f32 = jnp.float32
    N = feat_ref.shape[0]

    feat = feat_ref[...]                                  # (N, C)
    featT = featT_ref[...]                                # (C, N) -- shared by both grad matmuls
    W = w_ref[...]                                        # (C, Kp)
    b = b_ref[...]                                        # (1, Kp)

    # valid-class mask: lanes K..Kp-1 are layout padding only.
    valid = jax.lax.broadcasted_iota(jnp.int32, (N, Kp), 1) < K
    NEG = f32(-1e30)

    def softmax_entropy(z):
        zc = jnp.where(valid, z, NEG)                     # padded lanes -> -1e30
        m = jnp.max(zc, axis=-1, keepdims=True)
        zs = zc - m
        e = jnp.exp(zs)                                   # padded lanes underflow to 0
        s = jnp.sum(e, axis=-1, keepdims=True)
        p = e * pl.reciprocal(s, approx=True)             # divide on EUP slot
        logp = zs - jnp.log(s)
        ent = -jnp.sum(p * logp, axis=-1, keepdims=True)  # (N, 1)
        return p, logp, ent

    # ---- pass 1: original params -> logits, entropy, reliable mask, grads
    # TODO(synk): for large C/K, feed bf16 operands to these matmuls
    #             (preferred_element_type=f32) for the v6e/v7x bf16 MXU path.
    logits1 = jnp.dot(feat, W, preferred_element_type=f32) + b     # (N, Kp)
    logits_ref[...] = logits1
    p1, logp1, ent1 = softmax_entropy(logits1)
    mask1 = (ent1 < margin).astype(f32)                   # filter_ids_1, (N, 1)
    cnt1 = jnp.sum(mask1)
    inv1 = jnp.where(cnt1 > 0.0, 1.0 / cnt1, 0.0)
    # d(mean_i mask_i * H_i)/dz_j = (mask/cnt) * (-p_j * (log p_j + H))
    coef1 = (mask1 * inv1) * (-p1 * (logp1 + ent1))       # (N, Kp)
    gW1 = jnp.dot(featT, coef1, preferred_element_type=f32)        # (C, Kp)
    gb1 = jnp.sum(coef1, axis=0, keepdims=True)           # (1, Kp)

    # ---- SAM first_step: ascend along the gradient direction
    gnorm = jnp.sqrt(jnp.sum(gW1 * gW1) + jnp.sum(gb1 * gb1))
    scale = rho / (gnorm + 1e-12)
    W_adv = W + gW1 * scale
    b_adv = b + gb1 * scale

    # ---- pass 2: perturbed params; GAP features reused (no second x read)
    logits2 = jnp.dot(feat, W_adv, preferred_element_type=f32) + b_adv
    p2, logp2, ent2 = softmax_entropy(logits2)
    mask2 = mask1 * (ent2 < margin).astype(f32)           # filter_ids_2 within ids_1
    cnt2 = jnp.sum(mask2)
    loss2_sum = jnp.sum(ent2 * mask2)
    inv2 = jnp.where(cnt2 > 0.0, 1.0 / cnt2, 0.0)
    coef2 = (mask2 * inv2) * (-p2 * (logp2 + ent2))
    gW2 = jnp.dot(featT, coef2, preferred_element_type=f32)
    gb2 = jnp.sum(coef2, axis=0, keepdims=True)

    # ---- SAM second_step: restore original params + SGD(momentum) update.
    # Guarded: if no reliable sample survives, skip the update entirely.
    do_upd = cnt2 > 0.0
    mW_upd = momentum * mw_ref[...] + gW2
    mb_upd = momentum * mb_ref[...] + gb2
    mw_out[...] = jnp.where(do_upd, mW_upd, mw_ref[...])
    mb_out[...] = jnp.where(do_upd, mb_upd, mb_ref[...])
    w_out[...] = jnp.where(do_upd, W - lr * mW_upd, W)
    b_out[...] = jnp.where(do_upd, b - lr * mb_upd, b)

    # ---- lane-dense (1,128) stats slab: [sum(ent2*mask2), cnt2, cnt1, 0...]
    lane = jax.lax.broadcasted_iota(jnp.int32, (1, 128), 1)
    stats = jnp.where(lane == 0, loss2_sum,
            jnp.where(lane == 1, cnt2,
            jnp.where(lane == 2, cnt1, f32(0.0))))
    stats_ref[...] = stats


def _sar_head_call(feat, featT, W, b, mW, mb, *, K, margin, rho, lr, momentum):
    """Single fused pallas_call for one SAR adapt step on the (tiny) head."""
    N, C = feat.shape
    Kp = W.shape[1]
    kernel = functools.partial(_sar_head_kernel, K=K, Kp=Kp, margin=margin,
                               rho=rho, lr=lr, momentum=momentum)
    return pl.pallas_call(
        kernel,
        out_shape=(jax.ShapeDtypeStruct((N, Kp), jnp.float32),   # logits (pass 1)
                   jax.ShapeDtypeStruct((C, Kp), jnp.float32),   # W'
                   jax.ShapeDtypeStruct((1, Kp), jnp.float32),   # b'
                   jax.ShapeDtypeStruct((C, Kp), jnp.float32),   # momentum W'
                   jax.ShapeDtypeStruct((1, Kp), jnp.float32),   # momentum b'
                   jax.ShapeDtypeStruct((1, 128), jnp.float32)), # stats slab
        in_specs=[pl.BlockSpec((N, C), lambda: (0, 0)),
                  pl.BlockSpec((C, N), lambda: (0, 0)),
                  pl.BlockSpec((C, Kp), lambda: (0, 0)),
                  pl.BlockSpec((1, Kp), lambda: (0, 0)),
                  pl.BlockSpec((C, Kp), lambda: (0, 0)),
                  pl.BlockSpec((1, Kp), lambda: (0, 0))],
        out_specs=(pl.BlockSpec((N, Kp), lambda: (0, 0)),
                   pl.BlockSpec((C, Kp), lambda: (0, 0)),
                   pl.BlockSpec((1, Kp), lambda: (0, 0)),
                   pl.BlockSpec((C, Kp), lambda: (0, 0)),
                   pl.BlockSpec((1, Kp), lambda: (0, 0)),
                   pl.BlockSpec((1, 128), lambda: (0, 0))),
    )(feat, featT, W, b, mW, mb)


# --------------------------------------------------------------------------
# Jitted adapt step: head kernel + on-device EMA / NaN-guard / reset logic
# --------------------------------------------------------------------------
def _adapt_step(feat, featT, W, b, mW, mb, ema, ema_init, W0, b0,
                *, K, margin, rho, lr, momentum, reset_constant):
    logits_p, W_new, b_new, mW_new, mb_new, stats = _sar_head_call(
        feat, featT, W, b, mW, mb, K=K, margin=margin, rho=rho, lr=lr,
        momentum=momentum)

    loss2_sum = stats[0, 0]
    cnt2 = stats[0, 1]
    valid = cnt2 > 0.0                                   # empty reliable set -> skip EMA
    loss2 = jnp.where(valid, loss2_sum / jnp.maximum(cnt2, 1.0), 0.0)

    ema_new = jnp.where(valid,
                        jnp.where(ema_init, 0.9 * ema + 0.1 * loss2, loss2),
                        ema)
    ema_init_new = jnp.logical_or(ema_init, valid)
    reset_flag = jnp.logical_and(ema_init_new, ema_new < reset_constant)

    # On-device model/optimizer reset (EMA value intentionally kept, matching
    # the reference which overwrites self.ema with the returned value).
    W_out = jnp.where(reset_flag, W0, W_new)
    b_out = jnp.where(reset_flag, b0, b_new)
    mW_out = jnp.where(reset_flag, jnp.zeros_like(mW_new), mW_new)
    mb_out = jnp.where(reset_flag, jnp.zeros_like(mb_new), mb_new)

    return (logits_p[:, :K], W_out, b_out, mW_out, mb_out,
            ema_new, ema_init_new, reset_flag)


# --------------------------------------------------------------------------
# SAR wrapper (steps / episodic / margin / ema / reset semantics)
# --------------------------------------------------------------------------
class SARPallas:
    def __init__(self, in_channels, num_classes, steps=1, episodic=False,
                 margin_e0=0.4 * math.log(1000), reset_constant_em=0.2,
                 lr=1e-3, momentum=0.9, rho=0.05):
        assert steps > 0, "SAR requires >= 1 step(s) to forward and update"
        self.steps = steps
        self.episodic = episodic
        self.num_classes = num_classes
        self.margin_e0 = float(margin_e0)
        self.reset_constant_em = float(reset_constant_em)

        # class dim padded to a multiple of 128 for lane-dense stores
        Kp = max(128, ((num_classes + 127) // 128) * 128)
        self.Kp = Kp

        # deterministic linear-head init (nn.Linear-style uniform bounds),
        # padded classes carry zero weight/bias and zero gradient forever.
        k1, k2 = jax.random.split(jax.random.PRNGKey(42))
        bound = 1.0 / math.sqrt(in_channels)
        W_real = jax.random.uniform(k1, (in_channels, num_classes),
                                    jnp.float32, -bound, bound)
        b_real = jax.random.uniform(k2, (1, num_classes),
                                    jnp.float32, -bound, bound)
        self.W = jnp.zeros((in_channels, Kp), jnp.float32).at[:, :num_classes].set(W_real)
        self.b = jnp.zeros((1, Kp), jnp.float32).at[:, :num_classes].set(b_real)
        self.mW = jnp.zeros_like(self.W)
        self.mb = jnp.zeros_like(self.b)

        # copy_model_and_optimizer equivalent (device snapshots)
        self._W0, self._b0 = self.W, self.b

        # EMA kept on device: value + "initialized" flag (reference uses None)
        self.ema = jnp.float32(0.0)
        self.ema_init = jnp.array(False)
        self.last_reset_flag = jnp.array(False)

        self._adapt = jax.jit(functools.partial(
            _adapt_step, K=num_classes, margin=self.margin_e0, rho=float(rho),
            lr=float(lr), momentum=float(momentum),
            reset_constant=self.reset_constant_em))

    # ------------------------------------------------------------------
    def reset(self):
        self.W, self.b = self._W0, self._b0
        self.mW = jnp.zeros_like(self.W)
        self.mb = jnp.zeros_like(self.b)
        self.ema = jnp.float32(0.0)
        self.ema_init = jnp.array(False)

    # ------------------------------------------------------------------
    def forward(self, x_nchw):
        if self.episodic:
            self.reset()
        N, C, H, Wd = x_nchw.shape

        # Stream x in bf16 (halves HBM bytes of the only large tensor); the
        # GAP kernel accumulates in f32.  GAP is computed ONCE per forward():
        # it has no trainable params, so all adapt steps reuse `feat`.
        x3 = jnp.asarray(x_nchw, jnp.bfloat16).reshape(N, C, H * Wd)
        feat = _gap_features(x3, hw_true=H * Wd)          # (N, C) f32
        featT = feat.T                                    # (C, N), tiny; one transpose total

        outputs = None
        for _ in range(self.steps):
            (outputs, self.W, self.b, self.mW, self.mb,
             self.ema, self.ema_init, rflag) = self._adapt(
                feat, featT, self.W, self.b, self.mW, self.mb,
                self.ema, self.ema_init, self._W0, self._b0)
            # Device scalar; inspect self.last_reset_flag if you need the
            # reference's "ema < 0.2, now reset the model" log (reading it
            # here would force a host sync every forward()).
            self.last_reset_flag = rflag
        return outputs


# --------------------------------------------------------------------------
if __name__ == "__main__":
    key = jax.random.PRNGKey(0)
    N, C, H, W = 2, 4, 16, 16
    K = 10
    x = jax.random.normal(key, (N, C, H, W), dtype=jnp.float32)

    sar = SARPallas(in_channels=C, num_classes=K, steps=1, episodic=False)
    out = sar.forward(x)
    out = jax.block_until_ready(out)

    assert out.shape == (N, K)
    assert bool(jnp.all(jnp.isfinite(out)))
    print("KERNEL_OK")
</pallas_src>

<mosaic_0001>
module attributes {stable_mosaic.version = 11 : i64} {
  func.func @_gap_kernel(%arg0: i32, %arg1: i32, %arg2: memref<2x4x256xbf16, #tpu.memory_space<vmem>>, %arg3: memref<2x4xf32, #tpu.memory_space<vmem>>, %arg4: memref<2x4x128xf32, #tpu.memory_space<vmem>>) attributes {dimension_semantics = [#tpu.dimension_semantics<parallel>, #tpu.dimension_semantics<arbitrary>], iteration_bounds = array<i64: 1, 1>, scalar_prefetch = 0 : i64, scratch_operands = 1 : i64, tpu.core_type = #tpu.core_type<tc>, window_params = [{transform_indices = @transform_0, window_bounds = array<i64: 2, 4, 256>}, {transform_indices = @transform_1, window_bounds = array<i64: 2, 4>}]} {
    %c0_i32 = arith.constant 0 : i32
    %0 = arith.cmpi eq, %arg1, %c0_i32 : i32
    %1 = arith.extui %0 : i1 to i32
    %c0_i32_0 = arith.constant 0 : i32
    %2 = arith.cmpi ne, %1, %c0_i32_0 : i32
    scf.if %2 {
      %cst = arith.constant 0.000000e+00 : f32
      %14 = vector.broadcast %cst : f32 to vector<2x4x128xf32>
      %c0_11 = arith.constant 0 : index
      %c0_12 = arith.constant 0 : index
      %c0_13 = arith.constant 0 : index
      %15 = vector.load %arg4[%c0_11, %c0_12, %c0_13] : memref<2x4x128xf32, #tpu.memory_space<vmem>>, vector<2x4x128xf32>
      tpu.vector_store %arg4[%c0_11, %c0_12, %c0_13], %14 {strides = array<i32>} : memref<2x4x128xf32, #tpu.memory_space<vmem>>, vector<2x4x128xf32>,
    } else {
    }
    %c0 = arith.constant 0 : index
    %c0_1 = arith.constant 0 : index
    %c0_2 = arith.constant 0 : index
    %3 = vector.load %arg2[%c0, %c0_1, %c0_2] : memref<2x4x256xbf16, #tpu.memory_space<vmem>>, vector<2x4x256xbf16>
    %4 = arith.extf %3 : vector<2x4x256xbf16> to vector<2x4x256xf32>
    %5 = vector.extract_strided_slice %4 {offsets = [0, 0, 0], sizes = [2, 4, 128], strides = [1, 1, 1]} : vector<2x4x256xf32> to vector<2x4x128xf32>
    %6 = vector.extract_strided_slice %4 {offsets = [0, 0, 128], sizes = [2, 4, 128], strides = [1, 1, 1]} : vector<2x4x256xf32> to vector<2x4x128xf32>
    %7 = arith.addf %5, %6 : vector<2x4x128xf32>
    %c0_3 = arith.constant 0 : index
    %c0_4 = arith.constant 0 : index
    %c0_5 = arith.constant 0 : index
    %8 = vector.load %arg4[%c0_3, %c0_4, %c0_5] : memref<2x4x128xf32, #tpu.memory_space<vmem>>, vector<2x4x128xf32>
    %9 = arith.addf %8, %7 : vector<2x4x128xf32>
    %c0_6 = arith.constant 0 : index
    %c0_7 = arith.constant 0 : index
    %c0_8 = arith.constant 0 : index
    %10 = vector.load %arg4[%c0_6, %c0_7, %c0_8] : memref<2x4x128xf32, #tpu.memory_space<vmem>>, vector<2x4x128xf32>
    tpu.vector_store %arg4[%c0_6, %c0_7, %c0_8], %9 {strides = array<i32>} : memref<2x4x128xf32, #tpu.memory_space<vmem>>, vector<2x4x128xf32>,
    %c0_i32_9 = arith.constant 0 : i32
    %11 = arith.cmpi eq, %arg1, %c0_i32_9 : i32
    %12 = arith.extui %11 : i1 to i32
    %c0_i32_10 = arith.constant 0 : i32
    %13 = arith.cmpi ne, %12, %c0_i32_10 : i32
    scf.if %13 {
      %c0_11 = arith.constant 0 : index
      %c0_12 = arith.constant 0 : index
      %c0_13 = arith.constant 0 : index
      %14 = vector.load %arg4[%c0_11, %c0_12, %c0_13] : memref<2x4x128xf32, #tpu.memory_space<vmem>>, vector<2x4x128xf32>
      %cst = arith.constant dense<0.000000e+00> : vector<2x4xf32>
      %15 = vector.multi_reduction <add>, %14, %cst [2] : vector<2x4x128xf32> to vector<2x4xf32>
      %cst_14 = arith.constant 3.906250e-03 : f32
      %16 = vector.broadcast %cst_14 : f32 to vector<2x4xf32>
      %17 = arith.mulf %15, %16 : vector<2x4xf32>
      %c0_15 = arith.constant 0 : index
      %c0_16 = arith.constant 0 : index
      %18 = vector.load %arg3[%c0_15, %c0_16] : memref<2x4xf32, #tpu.memory_space<vmem>>, vector<2x4xf32>
      tpu.vector_store %arg3[%c0_15, %c0_16], %17 {strides = array<i32>} : memref<2x4xf32, #tpu.memory_space<vmem>>, vector<2x4xf32>,
    } else {
    }
    return
  }
  func.func @transform_0(%arg0: i32, %arg1: i32) -> (i32, i32, i32) {
    %c0_i32 = arith.constant 0 : i32
    %c0_i32_0 = arith.constant 0 : i32
    return %arg0, %c0_i32, %arg1 : i32, i32, i32
  }
  func.func @transform_1(%arg0: i32, %arg1: i32) -> (i32, i32) {
    %c0_i32 = arith.constant 0 : i32
    %c0_i32_0 = arith.constant 0 : i32
    return %arg0, %c0_i32 : i32, i32
  }
}

</mosaic_0001>

<bundles_post_ra>
// kernel: _gap_features.1
= control target key start
LH: loop header
LB: loop body
LE: loop exit
PB: predicated region body
PF: predicated region fallthrough
CT: control target
= control target key end

     0   :  { %6 = vsyncpa [#allocation4], 0  ;;  %s189_s0 = inlined_call_operand.hbm [shape: bf16[2,4,256], index: 0, kind: input, shape index: {}]   ;;  %s190_s1 = inlined_call_operand.hbm [shape: f32[2,4], index: 1, kind: output, shape index: {}]  }
   0x1   :  { %7 = vsyncpa [#allocation5], 0  ;;  %s150_s6 = smov [#allocation3]   ;;  %s102_s10 = scalar_lea.hbm %s189_s0, 128 }
   0x2   :  { %s13_s7 = sshll.u32 %s150_s6, 4  ;;  %p103_p0 = scmp.ne.s32.totalorder %s189_s0, %s102_s10  ;;  %s14_s7 = int_to_ptr.vmem [resolvable:$true] %s13_s7 }
   0x3   :  { %p106_p1 = scmp.lt.u32.totalorder %s102_s10, %s189_s0 }
   0x5   :  { %p108_p2 = pnand %p106_p1, %p103_p0 }
   0x7   :  { %111 = shalt.err (!%p108_p2)
}
   0x8   :  { %s112_s15 = scalar_lea.vmem %s14_s7, 128  ;;  %p117_p4 = scmp.lt.s32.totalorder %s14_s7, %s14_s7 }
   0x9   :  { %p113_p3 = scmp.ne.s32.totalorder %s14_s7, %s112_s15  ;;  %p118_p5 = scmp.lt.s32.totalorder %s112_s15, %s112_s15 }
   0xb   :  { %p119_p6 = por %p118_p5, %p117_p4 }
   0xd   :  { %p120_p7 = pnand %p119_p6, %p113_p3 }
   0xf   :  { %123 = shalt.err (!%p120_p7)
}
  0x10   :  { %s151_s16 = smov 64   ;;  %s152_s17 = smov 4  }
  0x11   :  { %19 = dma.hbm_to_vmem [thread:$0]  %s189_s0, 128, %s14_s7, [#allocation4], %s151_s16, %s151_s16, %s152_s17  }
  0x12   :  { %146 = dma.done.wait [#allocation4], 128  }
  0x13   :  { %147 = vsyncadd [#allocation4], 4294967168  ;;  %v153_v0 = vmov 0.0   ;;  %v94_v1 = vld [vmem:[#allocation3] sm:$0xff]   ;;  %vm52_vm0 = vcmask 1043456   ;;  %v63_v16 = vlaneseq  ;;  %s154_s0 = smov [#allocation6]  }
  0x14   :  { %27 = vst [vmem:[#allocation2] sm:$0xf] %v153_v0  ;;  %28 = vst [vmem:[#allocation2 + $0x4] sm:$0xf] %v153_v0  ;;  %v95_v2 = vunpack.c.l.bf16 %v94_v1  ;;  %v96_v3 = vunpack.c.h.bf16 %v94_v1  ;;  %s84_s20 = sshll.u32 %s154_s0, 4  ;;  %vm73_vm1 = vcmask 1041409   ;;  %s85_s20 = int_to_ptr.vmem [resolvable:$true] %s84_s20 }
  0x15   :  { %v64_v17 = vand.u32 127, %v63_v16  ;;  %v66_v18 = vshrl.u32 %v63_v16, 7  ;;  %vm76_vm2 = vcmask 25600   ;;  %s124_s21 = scalar_lea.vmem %s85_s20, 32  ;;  %p129_p9 = scmp.lt.s32.totalorder %s85_s20, %s85_s20 }
  0x16   :  { %v35_v4 = vrot.slane %v95_v2, 4  ;;  %v36_v5 = vrot.slane %v96_v3, 4  ;;  %p125_p8 = scmp.ne.s32.totalorder %s85_s20, %s124_s21  ;;  %p130_p10 = scmp.lt.s32.totalorder %s124_s21, %s124_s21 }
  0x17   :  { %v67_v20 = vsub.s32 %v64_v17, %v66_v18 }
  0x18   :  { %v39_v8 = vadd.f32 %v95_v2, %v35_v4  ;;  %v40_v9 = vadd.f32 %v96_v3, %v36_v5  ;;  %p131_p11 = por %p130_p10, %p129_p9 }
  0x1a   :  { %p132_p12 = pnand %p131_p11, %p125_p8 }
  0x1b   :  { %v41_v6 = vld [vmem:[#allocation2] sm:$0xf]  ;;  %v42_v7 = vld [vmem:[#allocation2 + $0x4] sm:$0xf] }
  0x1c   :  { %v43_v10 = vadd.f32 %v41_v6, %v39_v8  ;;  %v44_v11 = vadd.f32 %v42_v7, %v40_v9 }
  0x1e   :  { %45 = vst [vmem:[#allocation2] sm:$0xf] %v43_v10  ;;  %46 = vst [vmem:[#allocation2 + $0x4] sm:$0xf] %v44_v11 }
  0x25   :  { %v50_v12 = vld [vmem:[#allocation2] sm:$0xf]  ;;  %v51_v13 = vld [vmem:[#allocation2 + $0x4] sm:$0xf] }
  0x26   :  { %v53_v14 = vsel %vm52_vm0, %v50_v12, 0.0  ;;  %v56_v15 = vsel %vm52_vm0, %v51_v13, 0.0 }
  0x27   :  { %54 = vadd.xlane.f32.xlu0 %v53_v14 }
  0x2b   :  { %57 = vadd.xlane.f32.xlu0 %v56_v15 }
  0xb4   :  { %v55_v19 = vpop.xlane.xlu0 %54 }
  0xb5   :  { %v59_v21 = vmul.f32 0.00390625, %v55_v19 }
  0xb7   :  { %v68_v24 = vrot.slane %v59_v21, %v67_v20 }
  0xb8   :  { %v58_v22 = vpop.xlane.xlu0 %57 }
  0xb9   :  { %v60_v23 = vmul.f32 0.00390625, %v58_v22 }
  0xbb   :  { %v72_v25 = vrot.slane %v60_v23, %v67_v20 }
  0xbd   :  { %v74_v26 = vsel %vm73_vm1, %v72_v25, %v68_v24 }
  0xbe   :  { %77 = vst.msk [vmem:[#allocation6] sm:$0x3] %vm76_vm2, %v74_v26 }
  0xbf   :  { %135 = shalt.err (!%p132_p12)
}
  0xc0   :  { %s136_s24 = scalar_lea.hbm %s190_s1, 32 }
  0xc1   :  { %p137_p13 = scmp.ne.s32.totalorder %s190_s1, %s136_s24  ;;  %p140_p0 = scmp.lt.u32.totalorder %s136_s24, %s190_s1 }
  0xc3   :  { %p142_p1 = pnand %p140_p0, %p137_p13 }
  0xc5   :  { %145 = shalt.err (!%p142_p1)
}
  0xc6   :  { %87 = dma.vmem_to_hbm [thread:$0]  %s85_s20, 32, %s190_s1, [#allocation5]  }
  0xc7   :  { %148 = dma.done.wait [#allocation5], 32  }
  0xc8   :  { %149 = vsyncadd [#allocation5], 4294967264 }
  0xc9   :  { %91 = vsyncpa [#allocation4], 1 }
  0xca   :  { %92 = vsyncpa [#allocation5], 1 }

</bundles_post_ra>
